<compile_context>
chip_gen: v5e
topology: v5e:2x2
jax: 0.10.0
libtpu: 0.0.40
codegen_flags: <defaults>
</compile_context>

<pallas_src>
import math

import numpy as np
import jax
import jax.numpy as jnp
from jax import lax
from jax.experimental import pallas as pl
from jax.experimental.pallas import tpu as pltpu


# ----------------------------------------------------------------------------
# Pallas kernel: one grid step per batch element.
# ----------------------------------------------------------------------------
def _unet_up_kernel(x1_ref, x2_ref, mh_ref, kw_ref, bw1_ref, b1_ref,
                    bw2_ref, b2_ref, o_ref, xpad_ref, y1pad_ref):
    # x1_ref   : (1, H, W*C1)     skip connection, lane-dense row-major
    # x2_ref   : (1, H2, W2*C2)   low-res features
    # mh_ref   : (H, H2)          row interp matrix (align_corners=True)
    # kw_ref   : (W2*C2, W*C2)    kron(Mw.T, I_C2) column interp matrix
    # bw1_ref  : (3*W*Cin,  W*Cout)  banded conv1 weights (dy, dx, ci folded in K)
    # b1_ref   : (1, W*Cout)      conv1 bias tiled over W (f32)
    # bw2_ref  : (3*W*Cout, W*Cout)  banded conv2 weights
    # b2_ref   : (1, W*Cout)
    # o_ref    : (1, H, W*Cout)   lane-dense output block
    # xpad_ref : (H+2, W*Cin)     f32 scratch: row-padded conv1 input slab
    # y1pad_ref: (H+2, W*Cout)    f32 scratch: row-padded conv1 output slab
    H = o_ref.shape[1]
    cdt = bw1_ref.dtype  # compute dtype fed to the MXU (f32 or bf16)

    # Zero only the two halo rows of each scratch, every step (4 tiny stores).
    # Deliberately NOT "once under pl.when(program_id==0)": with "parallel"
    # dimension_semantics a second TensorCore may never execute step 0.
    xpad_ref[0:1, :] = jnp.zeros_like(xpad_ref[0:1, :])
    xpad_ref[H + 1:H + 2, :] = jnp.zeros_like(xpad_ref[H + 1:H + 2, :])
    y1pad_ref[0:1, :] = jnp.zeros_like(y1pad_ref[0:1, :])
    y1pad_ref[H + 1:H + 2, :] = jnp.zeros_like(y1pad_ref[H + 1:H + 2, :])

    # --- fused bilinear upsample (align_corners=True): two lane-dense matmuls
    x2 = x2_ref[0]                                                     # (H2, W2*C2)
    uph = jnp.dot(mh_ref[...], x2, preferred_element_type=jnp.float32)  # (H, W2*C2)
    up = jnp.dot(uph.astype(cdt), kw_ref[...],
                 preferred_element_type=jnp.float32)                   # (H, W*C2)

    # --- channel concat (split layout: [x1 row-major | up row-major]) and
    #     interior rows of the row-padded slab.  The W (column) zero padding is
    #     folded into the banded weights, so no lane padding is needed.
    xsplit = jnp.concatenate([x1_ref[0].astype(jnp.float32), up], axis=-1)
    xpad_ref[1:H + 1, :] = xsplit                                      # (H, W*Cin)

    # --- conv1 + bias + ReLU: ONE (H, 3*W*Cin) @ (3*W*Cin, W*Cout) matmul.
    #     Lane concat is tile-aligned (each piece is a multiple of 128 lanes).
    slab1 = jnp.concatenate(
        [xpad_ref[0:H, :], xsplit, xpad_ref[2:H + 2, :]], axis=-1)
    y1 = jnp.dot(slab1.astype(cdt), bw1_ref[...],
                 preferred_element_type=jnp.float32)
    y1 = jnp.maximum(y1 + b1_ref[...], 0.0)                            # (H, W*Cout)

    y1pad_ref[1:H + 1, :] = y1

    # --- conv2 + bias + ReLU (same banded single-matmul structure).
    slab2 = jnp.concatenate(
        [y1pad_ref[0:H, :], y1, y1pad_ref[2:H + 2, :]], axis=-1)
    y2 = jnp.dot(slab2.astype(cdt), bw2_ref[...],
                 preferred_element_type=jnp.float32)
    y2 = jnp.maximum(y2 + b2_ref[...], 0.0)

    o_ref[0] = y2.astype(o_ref.dtype)                                  # lane-dense store


# ----------------------------------------------------------------------------
# Host-side helpers (run in XLA, outside the kernel)
# ----------------------------------------------------------------------------
def _interp_matrix(in_size, out_size):
    """Bilinear interp matrix (out_size, in_size), align_corners=True."""
    if in_size == 1:
        return jnp.ones((out_size, 1), jnp.float32)
    src = jnp.arange(out_size, dtype=jnp.float32) * (in_size - 1) / float(out_size - 1)
    i0 = jnp.clip(jnp.floor(src).astype(jnp.int32), 0, in_size - 2)
    frac = src - i0.astype(jnp.float32)
    rows = jnp.arange(out_size)
    M = jnp.zeros((out_size, in_size), jnp.float32)
    M = M.at[rows, i0].add(1.0 - frac)
    M = M.at[rows, i0 + 1].add(frac)
    return M


def _conv_band_matrix(w_hwio, W, K, col_base, col_stride):
    """Banded weight matrix B of shape (3*K, W*Cout).

    For a slab whose lane layout within one row-tap block is
        slab_col(w_i, ci) = col_base[ci] + w_i * col_stride[ci]
    and whose 3 row-tap blocks hold the input rows h-1, h, h+1 (zero for
    out-of-range rows), the SAME-padded 3x3 conv is  out = slab @ B :
    row zero-padding is carried by the slab, column zero-padding simply by
    omitting the out-of-range (w_o, dx) taps here.
    """
    kh, kw_, Cin, Cout = w_hwio.shape
    col_base = np.asarray(col_base)
    col_stride = np.asarray(col_stride)
    B = jnp.zeros((kh * K, W * Cout), dtype=w_hwio.dtype)
    for dy in range(kh):
        for dx in range(kw_):
            w_o = np.arange(W)
            w_i = w_o + dx - (kw_ // 2)
            ok = (w_i >= 0) & (w_i < W)
            w_o, w_i = w_o[ok], w_i[ok]
            rows = dy * K + col_base[None, :] + w_i[:, None] * col_stride[None, :]  # (Wv, Cin)
            cols = w_o[:, None] * Cout + np.arange(Cout)[None, :]                   # (Wv, Cout)
            vals = jnp.broadcast_to(w_hwio[dy, dx][None], (len(w_o), Cin, Cout))
            B = B.at[rows[:, :, None], cols[:, None, :]].set(vals)
    return B


# ----------------------------------------------------------------------------
# Wrapper: takes NCHW (PyTorch layout), returns NCHW.
# ----------------------------------------------------------------------------
def unet_up_forward(inputs1_nchw, inputs2_nchw, params, inputs1_size,
                    compute_dtype=jnp.float32):
    H, W = inputs1_size
    N, C1, H1, W1 = inputs1_nchw.shape
    _, C2, H2, W2 = inputs2_nchw.shape
    assert (H1, W1) == (H, W)
    Cin = C1 + C2
    Cout = params["w1"].shape[-1]
    assert params["w1"].shape[2] == Cin

    # Lane-dense row-major (H, W*C) activation layouts (NCHW plumbing in XLA).
    x1_2d = jnp.transpose(inputs1_nchw, (0, 2, 3, 1)).reshape(N, H, W * C1)
    x2_2d = jnp.transpose(inputs2_nchw, (0, 2, 3, 1)).reshape(N, H2, W2 * C2)

    # Interp matrices for the fused align_corners=True bilinear upsample.
    Mh = _interp_matrix(H2, H)                                    # (H, H2)
    Mw = _interp_matrix(W2, W)                                    # (W, W2)
    Kw = jnp.kron(Mw.T, jnp.eye(C2, dtype=jnp.float32))           # (W2*C2, W*C2)

    # Banded conv weights matched to the in-kernel slab layouts.
    # conv1 slab uses the "split" channel layout [x1 | up]:
    base1 = np.concatenate([np.arange(C1), W * C1 + np.arange(C2)])
    stride1 = np.concatenate([np.full(C1, C1), np.full(C2, C2)])
    bw1 = _conv_band_matrix(params["w1"], W, W * Cin, base1, stride1)   # (3*W*Cin, W*Cout)
    # conv2 slab is plain row-major (H, W*Cout):
    bw2 = _conv_band_matrix(params["w2"], W, W * Cout,
                            np.arange(Cout), np.full(Cout, Cout))        # (3*W*Cout, W*Cout)

    # Biases tiled across W so they broadcast against the (H, W*Cout) output.
    b1t = jnp.tile(params["b1"].reshape(1, Cout), (1, W)).astype(jnp.float32)
    b2t = jnp.tile(params["b2"].reshape(1, Cout), (1, W)).astype(jnp.float32)

    cdt = compute_dtype
    isz = jnp.dtype(cdt).itemsize
    flops = N * (2 * H * (3 * W * Cin) * (W * Cout)          # conv1
                 + 2 * H * (3 * W * Cout) * (W * Cout)       # conv2
                 + 2 * H * H2 * (W2 * C2)                     # row interp
                 + 2 * H * (W2 * C2) * (W * C2))              # col interp
    bytes_accessed = (N * (H * W * C1 + H2 * W2 * C2) * isz
                      + (H * H2 + (W2 * C2) * (W * C2)
                         + 3 * W * Cin * W * Cout + 3 * W * Cout * W * Cout) * isz
                      + 2 * W * Cout * 4
                      + N * H * W * Cout * 4)

    out2d = pl.pallas_call(
        _unet_up_kernel,
        out_shape=jax.ShapeDtypeStruct((N, H, W * Cout), jnp.float32),
        grid_spec=pltpu.PrefetchScalarGridSpec(
            num_scalar_prefetch=0,
            grid=(N,),
            in_specs=[
                pl.BlockSpec((1, H, W * C1), lambda n: (n, 0, 0)),
                pl.BlockSpec((1, H2, W2 * C2), lambda n: (n, 0, 0)),
                pl.BlockSpec((H, H2), lambda n: (0, 0)),
                pl.BlockSpec((W2 * C2, W * C2), lambda n: (0, 0)),
                # NOTE: weight index_maps are constant; at realistic channel
                # counts consider pipeline_mode=pl.Buffered(1) to single-buffer.
                pl.BlockSpec((3 * W * Cin, W * Cout), lambda n: (0, 0)),
                pl.BlockSpec((1, W * Cout), lambda n: (0, 0)),
                pl.BlockSpec((3 * W * Cout, W * Cout), lambda n: (0, 0)),
                pl.BlockSpec((1, W * Cout), lambda n: (0, 0)),
            ],
            out_specs=pl.BlockSpec((1, H, W * Cout), lambda n: (n, 0, 0)),
            scratch_shapes=[
                pltpu.VMEM((H + 2, W * Cin), jnp.float32),    # row-padded conv1 input
                pltpu.VMEM((H + 2, W * Cout), jnp.float32),   # row-padded conv1 output
            ],
        ),
        compiler_params=pltpu.CompilerParams(
            dimension_semantics=("parallel",),
            vmem_limit_bytes=32 * 1024 * 1024,
        ),
        cost_estimate=pl.CostEstimate(flops=int(flops), transcendentals=0,
                                      bytes_accessed=int(bytes_accessed)),
    )(x1_2d.astype(cdt), x2_2d.astype(cdt), Mh.astype(cdt), Kw.astype(cdt),
      bw1.astype(cdt), b1t, bw2.astype(cdt), b2t)

    out_nhwc = out2d.reshape(N, H, W, Cout)
    return jnp.transpose(out_nhwc, (0, 3, 1, 2))                   # back to NCHW


# ----------------------------------------------------------------------------
# Pure-JAX reference (for correctness check)
# ----------------------------------------------------------------------------
def _bilinear_up_nhwc(x, out_h, out_w):
    _, H, W, _ = x.shape
    Mh = _interp_matrix(H, out_h)
    Mw = _interp_matrix(W, out_w)
    y = jnp.einsum('oh,nhwc->nowc', Mh, x)
    y = jnp.einsum('pw,nowc->nopc', Mw, y)
    return y


def unet_up_reference(inputs1_nchw, inputs2_nchw, params, inputs1_size):
    H, W = inputs1_size
    x1 = jnp.transpose(inputs1_nchw, (0, 2, 3, 1))
    x2 = jnp.transpose(inputs2_nchw, (0, 2, 3, 1))
    up = _bilinear_up_nhwc(x2, H, W)
    x = jnp.concatenate([x1, up], axis=-1)
    dn = ('NHWC', 'HWIO', 'NHWC')
    y = lax.conv_general_dilated(x, params["w1"], (1, 1), 'SAME',
                                 dimension_numbers=dn)
    y = jnp.maximum(y + params["b1"].reshape(1, 1, 1, -1), 0.0)
    y = lax.conv_general_dilated(y, params["w2"], (1, 1), 'SAME',
                                 dimension_numbers=dn)
    y = jnp.maximum(y + params["b2"].reshape(1, 1, 1, -1), 0.0)
    return jnp.transpose(y, (0, 3, 1, 2))


def init_params(key, in_channels, out_channels):
    k1, k2, k3, k4 = jax.random.split(key, 4)
    s1 = 1.0 / math.sqrt(in_channels * 9)
    s2 = 1.0 / math.sqrt(out_channels * 9)
    return {
        "w1": jax.random.normal(k1, (3, 3, in_channels, out_channels), jnp.float32) * s1,
        "b1": jax.random.normal(k2, (1, out_channels), jnp.float32) * s1,
        "w2": jax.random.normal(k3, (3, 3, out_channels, out_channels), jnp.float32) * s2,
        "b2": jax.random.normal(k4, (1, out_channels), jnp.float32) * s2,
    }


if __name__ == "__main__":
    key = jax.random.PRNGKey(0)
    kp, kx1, kx2 = jax.random.split(key, 3)

    # inputs1: skip connection (N, C1, H, W); inputs2: low-res features (N, C2, H/2, W/2)
    # Unet_Up(in_channels=C1+C2=8, out_channels=8, inputs1_size=(16, 16))
    inputs1 = jax.random.normal(kx1, (2, 4, 16, 16), jnp.float32)
    inputs2 = jax.random.normal(kx2, (2, 4, 8, 8), jnp.float32)
    params = init_params(kp, in_channels=8, out_channels=8)

    ref = unet_up_reference(inputs1, inputs2, params, (16, 16))

    # f32 path (exact module semantics).
    out = unet_up_forward(inputs1, inputs2, params, (16, 16))
    jax.block_until_ready(out)
    assert out.shape == (2, 8, 16, 16), out.shape
    assert jnp.allclose(out, ref, atol=1e-4, rtol=1e-4), (
        float(jnp.max(jnp.abs(out - ref))))

    # bf16-on-MXU path (f32 accumulation) -- loose tolerance vs f32 reference.
    out_bf16 = unet_up_forward(inputs1, inputs2, params, (16, 16),
                               compute_dtype=jnp.bfloat16)
    jax.block_until_ready(out_bf16)
    assert out_bf16.shape == (2, 8, 16, 16)
    assert float(jnp.max(jnp.abs(out_bf16 - ref))) < 1e-1

    print("KERNEL_OK")
</pallas_src>

<mosaic_0001>
module attributes {stable_mosaic.version = 11 : i64} {
  func.func @_unet_up_kernel(%arg0: i32, %arg1: memref<1x16x64xf32, #tpu.memory_space<vmem>>, %arg2: memref<1x8x32xf32, #tpu.memory_space<vmem>>, %arg3: memref<16x8xf32, #tpu.memory_space<vmem>>, %arg4: memref<32x64xf32, #tpu.memory_space<vmem>>, %arg5: memref<384x128xf32, #tpu.memory_space<vmem>>, %arg6: memref<1x128xf32, #tpu.memory_space<vmem>>, %arg7: memref<384x128xf32, #tpu.memory_space<vmem>>, %arg8: memref<1x128xf32, #tpu.memory_space<vmem>>, %arg9: memref<1x16x128xf32, #tpu.memory_space<vmem>>, %arg10: memref<18x128xf32, #tpu.memory_space<vmem>>, %arg11: memref<18x128xf32, #tpu.memory_space<vmem>>) attributes {dimension_semantics = [#tpu.dimension_semantics<parallel>], iteration_bounds = array<i64: 2>, scalar_prefetch = 0 : i64, scratch_operands = 2 : i64, tpu.core_type = #tpu.core_type<tc>, window_params = [{transform_indices = @transform_0, window_bounds = array<i64: 1, 16, 64>}, {transform_indices = @transform_1, window_bounds = array<i64: 1, 8, 32>}, {pipeline_mode = #tpu.pipeline_mode<synchronous>, transform_indices = @transform_2, window_bounds = array<i64: 16, 8>}, {pipeline_mode = #tpu.pipeline_mode<synchronous>, transform_indices = @transform_3, window_bounds = array<i64: 32, 64>}, {pipeline_mode = #tpu.pipeline_mode<synchronous>, transform_indices = @transform_4, window_bounds = array<i64: 384, 128>}, {pipeline_mode = #tpu.pipeline_mode<synchronous>, transform_indices = @transform_5, window_bounds = array<i64: 1, 128>}, {pipeline_mode = #tpu.pipeline_mode<synchronous>, transform_indices = @transform_6, window_bounds = array<i64: 384, 128>}, {pipeline_mode = #tpu.pipeline_mode<synchronous>, transform_indices = @transform_7, window_bounds = array<i64: 1, 128>}, {transform_indices = @transform_8, window_bounds = array<i64: 1, 16, 128>}]} {
    %cst = arith.constant 0.000000e+00 : f32
    %0 = vector.broadcast %cst : f32 to vector<1x128xf32>
    %c0 = arith.constant 0 : index
    %c0_0 = arith.constant 0 : index
    %1 = vector.load %arg10[%c0, %c0_0] : memref<18x128xf32, #tpu.memory_space<vmem>>, vector<1x128xf32>
    tpu.vector_store %arg10[%c0, %c0_0], %0 {strides = array<i32>} : memref<18x128xf32, #tpu.memory_space<vmem>>, vector<1x128xf32>,
    %cst_1 = arith.constant 0.000000e+00 : f32
    %2 = vector.broadcast %cst_1 : f32 to vector<1x128xf32>
    %c17 = arith.constant 17 : index
    %c0_2 = arith.constant 0 : index
    %3 = vector.load %arg10[%c17, %c0_2] : memref<18x128xf32, #tpu.memory_space<vmem>>, vector<1x128xf32>
    tpu.vector_store %arg10[%c17, %c0_2], %2 {strides = array<i32>} : memref<18x128xf32, #tpu.memory_space<vmem>>, vector<1x128xf32>,
    %cst_3 = arith.constant 0.000000e+00 : f32
    %4 = vector.broadcast %cst_3 : f32 to vector<1x128xf32>
    %c0_4 = arith.constant 0 : index
    %c0_5 = arith.constant 0 : index
    %5 = vector.load %arg11[%c0_4, %c0_5] : memref<18x128xf32, #tpu.memory_space<vmem>>, vector<1x128xf32>
    tpu.vector_store %arg11[%c0_4, %c0_5], %4 {strides = array<i32>} : memref<18x128xf32, #tpu.memory_space<vmem>>, vector<1x128xf32>,
    %cst_6 = arith.constant 0.000000e+00 : f32
    %6 = vector.broadcast %cst_6 : f32 to vector<1x128xf32>
    %c17_7 = arith.constant 17 : index
    %c0_8 = arith.constant 0 : index
    %7 = vector.load %arg11[%c17_7, %c0_8] : memref<18x128xf32, #tpu.memory_space<vmem>>, vector<1x128xf32>
    tpu.vector_store %arg11[%c17_7, %c0_8], %6 {strides = array<i32>} : memref<18x128xf32, #tpu.memory_space<vmem>>, vector<1x128xf32>,
    %c0_9 = arith.constant 0 : index
    %c0_10 = arith.constant 0 : index
    %c0_11 = arith.constant 0 : index
    %8 = vector.load %arg2[%c0_9, %c0_10, %c0_11] : memref<1x8x32xf32, #tpu.memory_space<vmem>>, vector<1x8x32xf32>
    %9 = vector.shape_cast %8 : vector<1x8x32xf32> to vector<8x32xf32>
    %c0_12 = arith.constant 0 : index
    %c0_13 = arith.constant 0 : index
    %10 = vector.load %arg3[%c0_12, %c0_13] : memref<16x8xf32, #tpu.memory_space<vmem>>, vector<16x8xf32>
    %cst_14 = arith.constant dense<0.000000e+00> : vector<16x32xf32>
    %11 = tpu.matmul %10, %9, %cst_14 {dimension_numbers = #tpu.dot_dimension_numbers<[1], [0], [0], [1], [0, 0, 1, 1], [], []>} : vector<16x8xf32>, vector<8x32xf32>, vector<16x32xf32> -> vector<16x32xf32>
    %c0_15 = arith.constant 0 : index
    %c0_16 = arith.constant 0 : index
    %12 = vector.load %arg4[%c0_15, %c0_16] : memref<32x64xf32, #tpu.memory_space<vmem>>, vector<32x64xf32>
    %cst_17 = arith.constant dense<0.000000e+00> : vector<16x64xf32>
    %13 = tpu.matmul %11, %12, %cst_17 {dimension_numbers = #tpu.dot_dimension_numbers<[1], [0], [0], [1], [0, 0, 1, 1], [], []>} : vector<16x32xf32>, vector<32x64xf32>, vector<16x64xf32> -> vector<16x64xf32>
    %c0_18 = arith.constant 0 : index
    %c0_19 = arith.constant 0 : index
    %c0_20 = arith.constant 0 : index
    %14 = vector.load %arg1[%c0_18, %c0_19, %c0_20] : memref<1x16x64xf32, #tpu.memory_space<vmem>>, vector<1x16x64xf32>
    %15 = vector.shape_cast %14 : vector<1x16x64xf32> to vector<16x64xf32>
    %16 = tpu.concatenate %15, %13 in 1 : vector<16x64xf32>, vector<16x64xf32> -> vector<16x128xf32>
    %c1 = arith.constant 1 : index
    %c0_21 = arith.constant 0 : index
    %17 = vector.load %arg10[%c1, %c0_21] : memref<18x128xf32, #tpu.memory_space<vmem>>, vector<16x128xf32>
    tpu.vector_store %arg10[%c1, %c0_21], %16 {strides = array<i32>} : memref<18x128xf32, #tpu.memory_space<vmem>>, vector<16x128xf32>,
    %c0_22 = arith.constant 0 : index
    %c0_23 = arith.constant 0 : index
    %18 = vector.load %arg10[%c0_22, %c0_23] : memref<18x128xf32, #tpu.memory_space<vmem>>, vector<16x128xf32>
    %c2 = arith.constant 2 : index
    %c0_24 = arith.constant 0 : index
    %19 = vector.load %arg10[%c2, %c0_24] : memref<18x128xf32, #tpu.memory_space<vmem>>, vector<16x128xf32>
    %20 = tpu.concatenate %18, %16, %19 in 1 : vector<16x128xf32>, vector<16x128xf32>, vector<16x128xf32> -> vector<16x384xf32>
    %c0_25 = arith.constant 0 : index
    %c0_26 = arith.constant 0 : index
    %21 = vector.load %arg5[%c0_25, %c0_26] : memref<384x128xf32, #tpu.memory_space<vmem>>, vector<384x128xf32>
    %cst_27 = arith.constant dense<0.000000e+00> : vector<16x128xf32>
    %22 = tpu.matmul %20, %21, %cst_27 {dimension_numbers = #tpu.dot_dimension_numbers<[1], [0], [0], [1], [0, 0, 1, 1], [], []>} : vector<16x384xf32>, vector<384x128xf32>, vector<16x128xf32> -> vector<16x128xf32>
    %c0_28 = arith.constant 0 : index
    %c0_29 = arith.constant 0 : index
    %23 = vector.load %arg6[%c0_28, %c0_29] : memref<1x128xf32, #tpu.memory_space<vmem>>, vector<1x128xf32>
    %24 = vector.broadcast %23 : vector<1x128xf32> to vector<16x128xf32>
    %25 = arith.addf %22, %24 : vector<16x128xf32>
    %cst_30 = arith.constant 0.000000e+00 : f32
    %26 = vector.broadcast %cst_30 : f32 to vector<16x128xf32>
    %27 = arith.maximumf %25, %26 : vector<16x128xf32>
    %c1_31 = arith.constant 1 : index
    %c0_32 = arith.constant 0 : index
    %28 = vector.load %arg11[%c1_31, %c0_32] : memref<18x128xf32, #tpu.memory_space<vmem>>, vector<16x128xf32>
    tpu.vector_store %arg11[%c1_31, %c0_32], %27 {strides = array<i32>} : memref<18x128xf32, #tpu.memory_space<vmem>>, vector<16x128xf32>,
    %c0_33 = arith.constant 0 : index
    %c0_34 = arith.constant 0 : index
    %29 = vector.load %arg11[%c0_33, %c0_34] : memref<18x128xf32, #tpu.memory_space<vmem>>, vector<16x128xf32>
    %c2_35 = arith.constant 2 : index
    %c0_36 = arith.constant 0 : index
    %30 = vector.load %arg11[%c2_35, %c0_36] : memref<18x128xf32, #tpu.memory_space<vmem>>, vector<16x128xf32>
    %31 = tpu.concatenate %29, %27, %30 in 1 : vector<16x128xf32>, vector<16x128xf32>, vector<16x128xf32> -> vector<16x384xf32>
    %c0_37 = arith.constant 0 : index
    %c0_38 = arith.constant 0 : index
    %32 = vector.load %arg7[%c0_37, %c0_38] : memref<384x128xf32, #tpu.memory_space<vmem>>, vector<384x128xf32>
    %cst_39 = arith.constant dense<0.000000e+00> : vector<16x128xf32>
    %33 = tpu.matmul %31, %32, %cst_39 {dimension_numbers = #tpu.dot_dimension_numbers<[1], [0], [0], [1], [0, 0, 1, 1], [], []>} : vector<16x384xf32>, vector<384x128xf32>, vector<16x128xf32> -> vector<16x128xf32>
    %c0_40 = arith.constant 0 : index
    %c0_41 = arith.constant 0 : index
    %34 = vector.load %arg8[%c0_40, %c0_41] : memref<1x128xf32, #tpu.memory_space<vmem>>, vector<1x128xf32>
    %35 = vector.broadcast %34 : vector<1x128xf32> to vector<16x128xf32>
    %36 = arith.addf %33, %35 : vector<16x128xf32>
    %cst_42 = arith.constant 0.000000e+00 : f32
    %37 = vector.broadcast %cst_42 : f32 to vector<16x128xf32>
    %38 = arith.maximumf %36, %37 : vector<16x128xf32>
    %c0_43 = arith.constant 0 : index
    %c0_44 = arith.constant 0 : index
    %c0_45 = arith.constant 0 : index
    %39 = vector.load %arg9[%c0_43, %c0_44, %c0_45] : memref<1x16x128xf32, #tpu.memory_space<vmem>>, vector<1x16x128xf32>
    %40 = vector.shape_cast %39 : vector<1x16x128xf32> to vector<16x128xf32>
    %41 = vector.shape_cast %38 : vector<16x128xf32> to vector<1x16x128xf32>
    tpu.vector_store %arg9[%c0_43, %c0_44, %c0_45], %41 {strides = array<i32>} : memref<1x16x128xf32, #tpu.memory_space<vmem>>, vector<1x16x128xf32>,
    return
  }
  func.func @transform_0(%arg0: i32) -> (i32, i32, i32) {
    %c0_i32 = arith.constant 0 : i32
    %c0_i32_0 = arith.constant 0 : i32
    %c0_i32_1 = arith.constant 0 : i32
    return %arg0, %c0_i32, %c0_i32_0 : i32, i32, i32
  }
  func.func @transform_1(%arg0: i32) -> (i32, i32, i32) {
    %c0_i32 = arith.constant 0 : i32
    %c0_i32_0 = arith.constant 0 : i32
    %c0_i32_1 = arith.constant 0 : i32
    return %arg0, %c0_i32, %c0_i32_0 : i32, i32, i32
  }
  func.func @transform_2(%arg0: i32) -> (i32, i32) {
    %c0_i32 = arith.constant 0 : i32
    %c0_i32_0 = arith.constant 0 : i32
    %c0_i32_1 = arith.constant 0 : i32
    return %c0_i32, %c0_i32_0 : i32, i32
  }
  func.func @transform_3(%arg0: i32) -> (i32, i32) {
    %c0_i32 = arith.constant 0 : i32
    %c0_i32_0 = arith.constant 0 : i32
    %c0_i32_1 = arith.constant 0 : i32
    return %c0_i32, %c0_i32_0 : i32, i32
  }
  func.func @transform_4(%arg0: i32) -> (i32, i32) {
    %c0_i32 = arith.constant 0 : i32
    %c0_i32_0 = arith.constant 0 : i32
    %c0_i32_1 = arith.constant 0 : i32
    return %c0_i32, %c0_i32_0 : i32, i32
  }
  func.func @transform_5(%arg0: i32) -> (i32, i32) {
    %c0_i32 = arith.constant 0 : i32
    %c0_i32_0 = arith.constant 0 : i32
    %c0_i32_1 = arith.constant 0 : i32
    return %c0_i32, %c0_i32_0 : i32, i32
  }
  func.func @transform_6(%arg0: i32) -> (i32, i32) {
    %c0_i32 = arith.constant 0 : i32
    %c0_i32_0 = arith.constant 0 : i32
    %c0_i32_1 = arith.constant 0 : i32
    return %c0_i32, %c0_i32_0 : i32, i32
  }
  func.func @transform_7(%arg0: i32) -> (i32, i32) {
    %c0_i32 = arith.constant 0 : i32
    %c0_i32_0 = arith.constant 0 : i32
    %c0_i32_1 = arith.constant 0 : i32
    return %c0_i32, %c0_i32_0 : i32, i32
  }
  func.func @transform_8(%arg0: i32) -> (i32, i32, i32) {
    %c0_i32 = arith.constant 0 : i32
    %c0_i32_0 = arith.constant 0 : i32
    %c0_i32_1 = arith.constant 0 : i32
    return %arg0, %c0_i32, %c0_i32_0 : i32, i32, i32
  }
}

</mosaic_0001>

<bundles_post_ra>
// kernel: tpu_custom_call.1
= control target key start
LH: loop header
LB: loop body
LE: loop exit
PB: predicated region body
PF: predicated region fallthrough
CT: control target
= control target key end

     0   :  { %s1442_s0 = inlined_call_operand.hbm [shape: f32[2,16,64], index: 0, kind: input, shape index: {}]   ;;  %s1443_s1 = inlined_call_operand.vmem [shape: f32[2,8,32], index: 1, kind: input, shape index: {}]   ;;  %s1444_s2 = inlined_call_operand.vmem [shape: f32[16,8], index: 2, kind: input, shape index: {}]   ;;  %s1445_s3 = inlined_call_operand.hbm [shape: f32[32,64], index: 3, kind: input, shape index: {}]   ;;  %s1446_s4 = inlined_call_operand.hbm [shape: f32[384,128], index: 4, kind: input, shape index: {}]   ;;  %s1447_s5 = inlined_call_operand.vmem [shape: f32[1,128], index: 5, kind: input, shape index: {}]   ;;  %s1448_s6 = inlined_call_operand.hbm [shape: f32[384,128], index: 6, kind: input, shape index: {}]   ;;  %s1449_s7 = inlined_call_operand.vmem [shape: f32[1,128], index: 7, kind: input, shape index: {}]   ;;  %s1450_s8 = inlined_call_operand.hbm [shape: f32[2,16,128], index: 8, kind: output, shape index: {}]  }
   0x1   :  { %1453 = sst [smem:[#allocation17_spill]] %s1445_s3 }
   0x2   :  { %1454 = sst [smem:[#allocation18_spill]] %s1446_s4 }
   0x3   :  { %13 = vsyncpa [#allocation5], 0 }
   0x4   :  { %15 = vsyncpa [#allocation5 + $0x1], 0 }
   0x5   :  { %16 = vsyncpa [#allocation8], 0 }
   0x6   :  { %17 = vsyncpa [#allocation11], 0 }
   0x7   :  { %18 = vsyncpa [#allocation6], 0 }
   0x8   :  { %20 = vsyncpa [#allocation6 + $0x1], 0  ;;  %s1245_s27 = smov 0   ;;  %s1247_s28 = smov 0  }
   0x9   :  { %s1249_s29 = smov 0   ;;  %s1251_s30 = smov 0  }
   0xa LB: > { %s1266_s9 = sadd.s32 4294967295, %s1189_s30   ;;  %s867_s10 = sadd.s32 4294967294, %s1189_s30   ;;  %s1189_s30 = sphi %s1251_s30, %s1469_s30   ;;  %s1185_s29 = sphi %s1249_s29, %s1468_s29   ;;  %s1181_s28 = sphi %s1247_s28, %s1467_s28   ;;  %s1177_s27 = sphi %s1245_s27, %s1466_s27  }
   0xb   : > { %p46_p0 = scmp.ne.s32.totalorder %s1181_s28, %s1177_s27  ;;  %p47_p1 = scmp.eq.s32.totalorder %s1266_s9, 0 }
   0xc   : > { %p222_p2 = scmp.eq.s32.totalorder %s1266_s9, 1  ;;  %p228_p3 = scmp.eq.s32.totalorder %s867_s10, 1 }
   0xd   : > { %p1275_p4 = por %p47_p1, %p46_p0  ;;  %p868_p5 = scmp.ge.s32.totalorder %s1189_s30, 1 }
   0xe   : > { %p1280_p6 = por %p228_p3, %p46_p0  ;;  %p235_p7 = scmp.lt.s32.totalorder %s1189_s30, 3 }
   0xf   : > { %s1457_s3 = sld [smem:[#allocation17_spill]]  ;;  %s1191_s17 = smov [#allocation7]  }
  0x10   : > { %p1288_p8 = pnand %p868_p5, %p235_p7  ;;  %s251_s18 = sshll.u32 %s1191_s17, 4  ;;  %s252_s18 = int_to_ptr.vmem [resolvable:$true] %s251_s18 }
  0x11   : > { %s1460_s4 = sld [smem:[#allocation18_spill]]  ;;  %s1451_s23 = smov 128  }
  0x12   : > { %p926_p9 = pneg %p1288_p8  ;;  %s1452_s24 = smov 8  }
  0x13   : > { %s1194_s25 = smov [#allocation9]   ;;  %s280_s14 = sshll.u32 %s1448_s6, 4  ;;  %s281_s14 = int_to_ptr.hbm [resolvable:$true] %s280_s14 }
  0x14   : > { %p1296_p10 = pnand %p926_p9, %p47_p1  ;;  %s265_s26 = sshll.u32 %s1194_s25, 4  ;;  %s266_s26 = int_to_ptr.vmem [resolvable:$true] %s265_s26 }
  0x15   : > { %s249_s15 = sshll.u32 %s1457_s3, 4  ;;  %s33_s21 = sadd.s32 1, %s1185_s29  ;;  %s250_s15 = int_to_ptr.hbm [resolvable:$true] %s249_s15 }
  0x16   : > { %929 = dma.hbm_to_vmem [thread:$0]  (!%p1296_p10), %s250_s15, 512, %s252_s18, [#allocation8], %s1451_s23, %s1451_s23, %s1452_s24  }
  0x17   : > { %s263_s22 = sshll.u32 %s1460_s4, 4  ;;  %s1195_s15 = smov [#allocation10]   ;;  %s264_s22 = int_to_ptr.hbm [resolvable:$true] %s263_s22 }
  0x18   : > { %932 = dma.hbm_to_vmem [thread:$0]  (!%p1296_p10), %s264_s22, 6144, %s266_s26, [#allocation8], %s1451_s23, %s1451_s23, %s1452_s24  }
  0x19   : > { %s282_s17 = sshll.u32 %s1195_s15, 4  ;;  %s1318_s18 = sadd.s32 1, %s1189_s30   ;;  %s283_s17 = int_to_ptr.vmem [resolvable:$true] %s282_s17 }
  0x1a   : > { %935 = dma.hbm_to_vmem [thread:$0]  (!%p1296_p10), %s281_s14, 6144, %s283_s17, [#allocation11], %s1451_s23, %s1451_s23, %s1452_s24  }
  0x1b   : > { %s30_s20 = ssub.s32 %s1189_s30, %s1318_s18  ;;  %p40_p13 = scmp.ne.s32.totalorder %s1185_s29, %s1181_s28 }
  0x1c   : > { %p31_p12 = scmp.eq.s32.totalorder %s30_s20, 0  ;;  %p41_p0 = scmp.eq.s32.totalorder %s1189_s30, 0 }
  0x1d   : > { %p1336_p3 = por %p222_p2, %p40_p13  ;;  %p947_p5 = scmp.lt.s32.totalorder %s1189_s30, 2 }
  0x1e   : > { %s1332_s25 = scalar_select %p31_p12, %s1185_s29, %s33_s21  }
  0x1f   : > { %s299_s26 = sand.u32 1, %s1185_s29   ;;  %s892_s19 = sshll.u32 %s1189_s30, 4 }
  0x20   : > { %p42_p7 = por %p41_p0, %p40_p13  ;;  %s873_s10 = sshll.u32 %s299_s26, 4 }
  0x21   : > { %s308_s14 = scalar_lea.hbm %s1442_s0, %s892_s19  ;;  %s303_s20 = scalar_lea.vmem [#allocation4], %s873_s10 }
  0x22   : > { %s309_s17 = sshll.u32 %s308_s14, 4  ;;  %s311_s23 = sshll.u32 %s303_s20, 4  ;;  %s310_s17 = int_to_ptr.hbm [resolvable:$true] %s309_s17  ;;  %s312_s23 = int_to_ptr.vmem [resolvable:$true] %s311_s23 }
  0x23   : > { %p1346_p9 = pnand %p947_p5, %p42_p7  ;;  %s300_s24 = scalar_lea.sflag [#allocation5], %s299_s26 }
  0x24   : > { %s1085_s3 = sshra.s32 %s310_s17, 4  ;;  %s1092_s10 = scalar_lea.hbm %s1442_s0, 32  ;;  %s1086_s3 = int_to_ptr.hbm [resolvable:$true] %s1085_s3 }
  0x25   : > { %s1087_s4 = scalar_lea.hbm %s1086_s3, 16  ;;  %p1089_p10 = pneg %p1346_p9 }
  0x26   : > { %p1088_p2 = scmp.ne.s32.totalorder %s1086_s3, %s1087_s4  ;;  %p1093_p0 = scmp.lt.s32.totalorder %s1086_s3, %s1442_s0 }
  0x27   : > { %p1094_p5 = scmp.lt.s32.totalorder %s1092_s10, %s1087_s4 }
  0x28   : > { %p1090_p12 = pnand %p1089_p10, %p1088_p2 }
  0x29   : > { %p1095_p7 = por %p1094_p5, %p1093_p0 }
  0x2a   : > { %p1091_p13 = pneg %p1090_p12 }
  0x2c   : > { %p1096_p11 = pnand %p1095_p7, %p1091_p13 }
  0x2e   : > { %1099 = shalt.err (!%p1096_p11)
}
  0x2f   : > { %s1463_s26 = smov 8   ;;  %s1464_s20 = smov 128  }
  0x30   : > { %939 = dma.hbm_to_vmem [thread:$0]  (!%p1346_p9), %s310_s17, 256, %s312_s23, %s300_s24, %s1464_s20, %s1464_s20, %s1463_s26  }
  0x31   : > { %330 = sbr.rel (%p1288_p8) target bundleno = 748 (0x2ec), region = 52  ;;  %s1366_s19 = sand.u32 (!%p1288_p8), 1, %s1181_s28  }
  0x32   : > { %s877_s3 = sshll.u32 (!%p1288_p8), %s1366_s19, 4  ;;  %s333_s4 = scalar_lea.sflag (!%p1288_p8), [#allocation5], %s1366_s19 }
  0x33   : > { %s1372_s13 = scalar_lea.vmem (!%p1288_p8), [#allocation4], %s877_s3 }
  0x36   : > { %1160 = dma.done.wait (%p1275_p4), %s333_s4, 256  }
  0x37   : > { %1162 = vsyncadd (%p1275_p4), %s333_s4, 4294967040 }
  0x38   : > { %1164 = dma.done.wait (%p47_p1), [#allocation8], 6656  }
  0x39   : > { %1166 = vsyncadd (%p47_p1), [#allocation8], 4294960640 }
  0x3a   : > { %1168 = dma.done.wait (%p47_p1), [#allocation11], 6144  }
  0x3b   : > { %1170 = vsyncadd (%p47_p1), [#allocation11], 4294961152  ;;  %p389_p8 = scmp.lt.s32.totalorder %s1266_s9, 1  ;;  %vm400_vm0 = vcmask 64512   ;;  %v398_v1 = vld [vmem:[%s1444_s2] sm:$0xff]  ;;  %v433_v2 = vld [vmem:[#allocation7 + $0x18] sm:$0xff] }
  0x3c   : > { %v432_v3 = vld [vmem:[#allocation7 + $0x10] sm:$0xff]  ;;  %453 = vmatpush.msra.mxu1 %v433_v2  ;;  %v431_v4 = vld [vmem:[#allocation7 + $0x8] sm:$0xff]  ;;  %v399_v5 = vld [vmem:[%s1444_s2 + $0x8] sm:$0xff]  ;;  %vm434_vm1 = vcmask 261120   ;;  %s1196_s26 = smov 64   ;;  %v1197_v50 = vmov 0.0  }
  0x3d   : > { %s390_s16 = scalar_select %p389_p8, %s1266_s9, 1  ;;  %v430_v6 = vld [vmem:[#allocation7] sm:$0xff]  ;;  %v514_v9 = vld [vmem:[#allocation9 + $0xf8] sm:$0xff]  ;;  %v513_v10 = vld [vmem:[#allocation9 + $0xf0] sm:$0xff]  ;;  %393 = vst [vmem:[#allocation2] sm:$0x1] %v1197_v50 }
  0x3e   : > { %454 = vmatpush.msra.mxu1 %v432_v3  ;;  %558 = vmatpush.msra.mxu3 %v514_v9  ;;  %v498_v11 = vld [vmem:[#allocation9 + $0x78] sm:$0xff]  ;;  %v512_v12 = vld [vmem:[#allocation9 + $0xe8] sm:$0xff]  ;;  %v497_v13 = vld [vmem:[#allocation9 + $0x70] sm:$0xff]  ;;  %394 = vst [vmem:[#allocation2 + $0x11] sm:$0x1] %v1197_v50  ;;  %vm474_vm2 = vcmask 523264  }
  0x3f   : > { %s882_s23 = sshll.u32 %s390_s16, 3  ;;  %535 = vmatpush.msra.mxu2 %v498_v11  ;;  %v496_v14 = vld [vmem:[#allocation9 + $0x68] sm:$0xff]  ;;  %v511_v15 = vld [vmem:[#allocation9 + $0xe0] sm:$0xff]  ;;  %v530_v16 = vld [vmem:[#allocation9 + $0x178] sm:$0xff]  ;;  %395 = vst [vmem:[#allocation3] sm:$0x1] %v1197_v50 }
  0x40   : > { %s392_s17 = scalar_lea.vmem %s1443_s1, %s882_s23  ;;  %455 = vmatpush.msra.mxu1 %v431_v4  ;;  %559 = vmatpush.msra.mxu3 %v513_v10  ;;  %v495_v17 = vld [vmem:[#allocation9 + $0x60] sm:$0xff]  ;;  %v529_v18 = vld [vmem:[#allocation9 + $0x170] sm:$0xff]  ;;  %v510_v19 = vld [vmem:[#allocation9 + $0xd8] sm:$0xff]  ;;  %396 = vst [vmem:[#allocation3 + $0x11] sm:$0x1] %v1197_v50  ;;  %s893_s23 = sshll.u32 %s1266_s9, 4 }
  0x41   : > { %v397_v0 = vld [vmem:[%s392_s17] sm:$0xff]  ;;  %536 = vmatpush.msra.mxu2 %v497_v13  ;;  %v528_v20 = vld [vmem:[#allocation9 + $0x168] sm:$0xff]  ;;  %v494_v21 = vld [vmem:[#allocation9 + $0x58] sm:$0xff]  ;;  %s749_s17 = scalar_lea.hbm %s1450_s8, %s893_s23  ;;  %s388_s21 = scalar_lea.vmem [#allocation12], %s877_s3 }
  0x42   : > { %422 = vmatpush.msra.mxu0 %v397_v0  ;;  %456 = vmatpush.msra.mxu1 %v430_v6  ;;  %v509_v22 = vld [vmem:[#allocation9 + $0xd0] sm:$0xff]  ;;  %v527_v23 = vld [vmem:[#allocation9 + $0x160] sm:$0xff]  ;;  %v508_v25 = vld [vmem:[#allocation9 + $0xc8] sm:$0xff]  ;;  %s750_s10 = sshll.u32 %s388_s21, 4  ;;  %s752_s15 = sshll.u32 %s749_s17, 4  ;;  %s751_s10 = int_to_ptr.vmem [resolvable:$true] %s750_s10  ;;  %s753_s15 = int_to_ptr.hbm [resolvable:$true] %s752_s15 }
  0x43   : > { %883 = vmatmul.msk.f32.vlgmr.msra.gmra.mxu0 %vm400_vm0, %v398_v1  ;;  %560 = vmatpush.msra.mxu3 %v512_v12  ;;  %v493_v24 = vld [vmem:[#allocation9 + $0x50] sm:$0xff]  ;;  %v526_v26 = vld [vmem:[#allocation9 + $0x158] sm:$0xff]  ;;  %v492_v27 = vld [vmem:[#allocation9 + $0x48] sm:$0xff]  ;;  %s738_s9 = scalar_lea.sflag [#allocation6], %s1366_s19  ;;  %s1129_s14 = sshra.s32 %s753_s15, 4  ;;  %s1130_s14 = int_to_ptr.hbm [resolvable:$true] %s1129_s14 }
  0x44   : > { %581 = vmatpush.msrb.mxu0 %v530_v16  ;;  %537 = vmatpush.msra.mxu2 %v496_v14  ;;  %v507_v28 = vld [vmem:[#allocation9 + $0xc0] sm:$0xff]  ;;  %v525_v29 = vld [vmem:[#allocation9 + $0x150] sm:$0xff]  ;;  %v506_v31 = vld [vmem:[#allocation9 + $0xb8] sm:$0xff]  ;;  %s1135_s4 = scalar_lea.hbm %s1450_s8, 32  ;;  %p1136_p9 = scmp.lt.s32.totalorder %s1130_s14, %s1450_s8 }
  0x45   : > { %561 = vmatpush.msra.mxu3 %v511_v15  ;;  %v491_v30 = vld [vmem:[#allocation9 + $0x40] sm:$0xff]  ;;  %v524_v32 = vld [vmem:[#allocation9 + $0x148] sm:$0xff]  ;;  %v490_v33 = vld [vmem:[#allocation9 + $0x38] sm:$0xff] }
  0x46   : > { %582 = vmatpush.msrb.mxu0 %v529_v18  ;;  %538 = vmatpush.msra.mxu2 %v495_v17  ;;  %v505_v34 = vld [vmem:[#allocation9 + $0xb0] sm:$0xff]  ;;  %v504_v36 = vld [vmem:[#allocation9 + $0xa8] sm:$0xff]  ;;  %v503_v38 = vld [vmem:[#allocation9 + $0xa0] sm:$0xff] }
  0x47   : > { %562 = vmatpush.msra.mxu3 %v510_v19  ;;  %v489_v35 = vld [vmem:[#allocation9 + $0x30] sm:$0xff]  ;;  %v488_v37 = vld [vmem:[#allocation9 + $0x28] sm:$0xff]  ;;  %v502_v39 = vld [vmem:[#allocation9 + $0x98] sm:$0xff] }
  0x48   : > { %583 = vmatpush.msrb.mxu0 %v528_v20  ;;  %539 = vmatpush.msra.mxu2 %v494_v21  ;;  %v501_v41 = vld [vmem:[#allocation9 + $0x90] sm:$0xff]  ;;  %v500_v42 = vld [vmem:[#allocation9 + $0x88] sm:$0xff]  ;;  %v487_v44 = vld [vmem:[#allocation9 + $0x20] sm:$0xff] }
  0x49   : > { %563 = vmatpush.msra.mxu3 %v509_v22  ;;  %v499_v45 = vld [vmem:[#allocation9 + $0x80] sm:$0xff]  ;;  %v486_v47 = vld [vmem:[#allocation9 + $0x18] sm:$0xff]  ;;  %v485_v49 = vld [vmem:[#allocation9 + $0x10] sm:$0xff] }
  0x4a   : > { %584 = vmatpush.msrb.mxu0 %v527_v23  ;;  %540 = vmatpush.msra.mxu2 %v493_v24  ;;  %v523_v46 = vld [vmem:[#allocation9 + $0x140] sm:$0xff]  ;;  %v522_v48 = vld [vmem:[#allocation9 + $0x138] sm:$0xff]  ;;  %v521_v51 = vld [vmem:[#allocation9 + $0x130] sm:$0xff] }
  0x4b   : > { %884 = vmatmul.msk.f32.gmra.mxu0 %vm400_vm0, %v399_v5  ;;  %564 = vmatpush.msra.mxu3 %v508_v25  ;;  %v484_v52 = vld [vmem:[#allocation9 + $0x8] sm:$0xff]  ;;  %v483_v54 = vld [vmem:[#allocation9] sm:$0xff]  ;;  %v518_v56 = vld [vmem:[#allocation9 + $0x118] sm:$0xff] }
  0x4c   : > { %585 = vmatpush.msrb.mxu0 %v526_v26  ;;  %541 = vmatpush.msra.mxu2 %v492_v27  ;;  %v520_v53 = vld [vmem:[#allocation9 + $0x128] sm:$0xff]  ;;  %v519_v55 = vld [vmem:[#allocation9 + $0x120] sm:$0xff]  ;;  %v517_v57 = vld [vmem:[#allocation9 + $0x110] sm:$0xff] }
  0x4d   : > { %565 = vmatpush.msra.mxu3 %v507_v28  ;;  %v516_v58 = vld [vmem:[#allocation9 + $0x108] sm:$0xff]  ;;  %v515_v59 = vld [vmem:[#allocation9 + $0x100] sm:$0xff]  ;;  %v643_v60 = vld [vmem:[#allocation10 + $0xf8] sm:$0xff] }
  0x4e   : > { %586 = vmatpush.msrb.mxu0 %v525_v29  ;;  %542 = vmatpush.msra.mxu2 %v491_v30  ;;  %v642_v61 = vld [vmem:[#allocation10 + $0xf0] sm:$0xff]  ;;  %v627_v62 = vld [vmem:[#allocation10 + $0x78] sm:$0xff]  ;;  %v641_v63 = vld [vmem:[#allocation10 + $0xe8] sm:$0xff] }
  0x4f   : > { %566 = vmatpush.msra.mxu3 %v506_v31  ;;  %664 = vmatpush.msrb.mxu1 %v627_v62  ;;  %v626_v0 = vld [vmem:[#allocation10 + $0x70] sm:$0xff]  ;;  %v625_v1 = vld [vmem:[#allocation10 + $0x68] sm:$0xff]  ;;  %v640_v3 = vld [vmem:[#allocation10 + $0xe0] sm:$0xff] }
  0x50   : > { %587 = vmatpush.msrb.mxu0 %v524_v32  ;;  %543 = vmatpush.msra.mxu2 %v490_v33  ;;  %v464_v2 = vld [vmem:[%s1372_s13] sm:$0xff]  ;;  %v639_v5 = vld [vmem:[#allocation10 + $0xd8] sm:$0xff]  ;;  %v657_v24 = vld [vmem:[#allocation10 + $0x168] sm:$0xff] }
  0x51   : > { %567 = vmatpush.msra.mxu3 %v505_v34  ;;  %665 = vmatpush.msrb.mxu1 %v626_v0  ;;  %v465_v9 = vld [vmem:[%s1372_s13 + $0x8] sm:$0xff]  ;;  %v624_v16 = vld [vmem:[#allocation10 + $0x60] sm:$0xff]  ;;  %v622_v21 = vld [vmem:[#allocation10 + $0x50] sm:$0xff] }
  0x52   : > { %544 = vmatpush.msra.mxu2 %v489_v35  ;;  %588 = vmatpush.msrb.mxu0 %v523_v46  ;;  %v636_v17 = vld [vmem:[#allocation10 + $0xc0] sm:$0xff]  ;;  %v623_v18 = vld [vmem:[#allocation10 + $0x58] sm:$0xff]  ;;  %v634_v22 = vld [vmem:[#allocation10 + $0xb0] sm:$0xff] }
  0x53   : > { %568 = vmatpush.msra.mxu3 %v504_v36  ;;  %666 = vmatpush.msrb.mxu1 %v625_v1  ;;  %v635_v19 = vld [vmem:[#allocation10 + $0xb8] sm:$0xff]  ;;  %v658_v23 = vld [vmem:[#allocation10 + $0x170] sm:$0xff]  ;;  %v621_v25 = vld [vmem:[#allocation10 + $0x48] sm:$0xff] }
  0x54   : > { %545 = vmatpush.msra.mxu2 %v488_v37  ;;  %589 = vmatpush.msrb.mxu0 %v522_v48  ;;  %v659_v20 = vld [vmem:[#allocation10 + $0x178] sm:$0xff]  ;;  %v633_v26 = vld [vmem:[#allocation10 + $0xa8] sm:$0xff]  ;;  %v620_v27 = vld [vmem:[#allocation10 + $0x40] sm:$0xff] }
  0x55   : > { %569 = vmatpush.msra.mxu3 %v503_v38  ;;  %667 = vmatpush.msrb.mxu1 %v624_v16  ;;  %v632_v28 = vld [vmem:[#allocation10 + $0xa0] sm:$0xff]  ;;  %v619_v30 = vld [vmem:[#allocation10 + $0x38] sm:$0xff]  ;;  %v618_v33 = vld [vmem:[#allocation10 + $0x30] sm:$0xff] }
  0x56   : > { %546 = vmatpush.msra.mxu2 %v487_v44  ;;  %590 = vmatpush.msrb.mxu0 %v521_v51  ;;  %v656_v29 = vld [vmem:[#allocation10 + $0x160] sm:$0xff]  ;;  %v631_v31 = vld [vmem:[#allocation10 + $0x98] sm:$0xff]  ;;  %v630_v34 = vld [vmem:[#allocation10 + $0x90] sm:$0xff] }
  0x57   : > { %570 = vmatpush.msra.mxu3 %v502_v39  ;;  %668 = vmatpush.msrb.mxu1 %v623_v18  ;;  %v655_v32 = vld [vmem:[#allocation10 + $0x158] sm:$0xff]  ;;  %v654_v35 = vld [vmem:[#allocation10 + $0x150] sm:$0xff]  ;;  %v617_v36 = vld [vmem:[#allocation10 + $0x28] sm:$0xff] }
  0x58   : > { %547 = vmatpush.msra.mxu2 %v486_v47  ;;  %591 = vmatpush.msrb.mxu0 %v520_v53  ;;  %v629_v37 = vld [vmem:[#allocation10 + $0x88] sm:$0xff]  ;;  %v616_v39 = vld [vmem:[#allocation10 + $0x20] sm:$0xff]  ;;  %v614_v44 = vld [vmem:[#allocation10 + $0x10] sm:$0xff] }
  0x59   : > { %571 = vmatpush.msra.mxu3 %v501_v41  ;;  %669 = vmatpush.msrb.mxu1 %v622_v21  ;;  %v653_v38 = vld [vmem:[#allocation10 + $0x148] sm:$0xff]  ;;  %v652_v41 = vld [vmem:[#allocation10 + $0x140] sm:$0xff]  ;;  %v647_v50 = vld [vmem:[#allocation10 + $0x118] sm:$0xff] }
  0x5a   : > { %548 = vmatpush.msra.mxu2 %v485_v49  ;;  %592 = vmatpush.msrb.mxu0 %v519_v55  ;;  %v613_v46 = vld [vmem:[#allocation10 + $0x8] sm:$0xff]  ;;  %v612_v48 = vld [vmem:[#allocation10] sm:$0xff]  ;;  %v646_v51 = vld [vmem:[#allocation10 + $0x110] sm:$0xff] }
  0x5b   : > { %572 = vmatpush.msra.mxu3 %v500_v42  ;;  %670 = vmatpush.msrb.mxu1 %v621_v25  ;;  %v615_v42 = vld [vmem:[#allocation10 + $0x18] sm:$0xff]  ;;  %v649_v47 = vld [vmem:[#allocation10 + $0x128] sm:$0xff]  ;;  %v648_v49 = vld [vmem:[#allocation10 + $0x120] sm:$0xff] }
  0x5c   : > { %549 = vmatpush.msra.mxu2 %v484_v52  ;;  %593 = vmatpush.msrb.mxu0 %v518_v56  ;;  %v645_v52 = vld [vmem:[#allocation10 + $0x108] sm:$0xff]  ;;  %v644_v53 = vld [vmem:[#allocation10 + $0x100] sm:$0xff] }
  0x5d   : > { %573 = vmatpush.msra.mxu3 %v499_v45  ;;  %671 = vmatpush.msrb.mxu1 %v620_v27  ;;  %v650_v45 = vld [vmem:[#allocation10 + $0x130] sm:$0xff] }
  0x5e   : > { %550 = vmatpush.msra.mxu2 %v483_v54  ;;  %594 = vmatpush.msrb.mxu0 %v517_v57  ;;  %v993_v54 = vld [vmem:[%s1447_s5] ss:$0 sm:$0xff] }
  0x5f   : > { %710 = vmatpush.msrb.mxu3 %v659_v20  ;;  %672 = vmatpush.msrb.mxu1 %v619_v30 }
  0x60   : > { %595 = vmatpush.msrb.mxu0 %v516_v58  ;;  %894 = vmatpush.msrb.mxu2 %v643_v60 }
  0x61   : > { %711 = vmatpush.msrb.mxu3 %v658_v23  ;;  %673 = vmatpush.msrb.mxu1 %v618_v33 }
  0x62   : > { %596 = vmatpush.msrb.mxu0 %v515_v59  ;;  %895 = vmatpush.msrb.mxu2 %v642_v61 }
  0x63   : > { %712 = vmatpush.msrb.mxu3 %v657_v24  ;;  %674 = vmatpush.msrb.mxu1 %v617_v36 }
  0x64   : > { %687 = vmatpush.msra.mxu0 %v643_v60  ;;  %896 = vmatpush.msrb.mxu2 %v641_v63 }
  0x65   : > { %713 = vmatpush.msrb.mxu3 %v656_v29  ;;  %675 = vmatpush.msrb.mxu1 %v616_v39 }
  0x66   : > { %688 = vmatpush.msra.mxu0 %v642_v61  ;;  %897 = vmatpush.msrb.mxu2 %v640_v3 }
  0x67   : > { %714 = vmatpush.msrb.mxu3 %v655_v32  ;;  %676 = vmatpush.msrb.mxu1 %v615_v42 }
  0x68   : > { %689 = vmatpush.msra.mxu0 %v641_v63  ;;  %898 = vmatpush.msrb.mxu2 %v639_v5 }
  0x69   : > { %715 = vmatpush.msrb.mxu3 %v654_v35  ;;  %677 = vmatpush.msrb.mxu1 %v614_v44 }
  0x6a   : > { %690 = vmatpush.msra.mxu0 %v640_v3 }
  0x6b   : > { %716 = vmatpush.msrb.mxu3 %v653_v38  ;;  %678 = vmatpush.msrb.mxu1 %v613_v46 }
  0x6c   : > { %691 = vmatpush.msra.mxu0 %v639_v5 }
  0x6d   : > { %717 = vmatpush.msrb.mxu3 %v652_v41  ;;  %679 = vmatpush.msrb.mxu1 %v612_v48 }
  0xc0   : > { %v424_v7 = vpop.f32.mrf.mxu0 }
  0xc1   : > { %885 = vmatmul.msk.f32.vlgmr.msra.gmra.mxu1 %vm434_vm1, %v424_v7  ;;  %v638_v7 = vld [vmem:[#allocation10 + $0xd0] sm:$0xff] }
  0xc2   : > { %692 = vmatpush.msra.mxu0 %v638_v7  ;;  %899 = vmatpush.msrb.mxu2 %v638_v7 }
  0xc8   : > { %v427_v8 = vpop.f32.mrf.mxu0 }
  0xc9   : > { %886 = vmatmul.msk.f32.gmra.mxu1 %vm434_vm1, %v427_v8  ;;  %v637_v8 = vld [vmem:[#allocation10 + $0xc8] sm:$0xff] }
  0xca   : > { %693 = vmatpush.msra.mxu0 %v637_v8  ;;  %900 = vmatpush.msrb.mxu2 %v637_v8 }
  0xcc   : > { %694 = vmatpush.msra.mxu0 %v636_v17  ;;  %901 = vmatpush.msrb.mxu2 %v636_v17 }
  0xce   : > { %695 = vmatpush.msra.mxu0 %v635_v19  ;;  %902 = vmatpush.msrb.mxu2 %v635_v19 }
  0xd0   : > { %696 = vmatpush.msra.mxu0 %v634_v22  ;;  %903 = vmatpush.msrb.mxu2 %v634_v22 }
  0xd2   : > { %697 = vmatpush.msra.mxu0 %v633_v26  ;;  %904 = vmatpush.msrb.mxu2 %v633_v26 }
  0xd4   : > { %698 = vmatpush.msra.mxu0 %v632_v28  ;;  %905 = vmatpush.msrb.mxu2 %v632_v28 }
  0xd6   : > { %699 = vmatpush.msra.mxu0 %v631_v31  ;;  %906 = vmatpush.msrb.mxu2 %v631_v31 }
  0xd8   : > { %700 = vmatpush.msra.mxu0 %v630_v34  ;;  %907 = vmatpush.msrb.mxu2 %v630_v34 }
  0xda   : > { %701 = vmatpush.msra.mxu0 %v629_v37  ;;  %908 = vmatpush.msrb.mxu2 %v629_v37 }
 0x13e   : > { %v458_v40 = vpop.f32.mrf.mxu1 }
 0x13f   : > { %468 = vrot.lane.b32.xlu0 %v458_v40, %s1196_s26  ;;  %v628_v40 = vld [vmem:[#allocation10 + $0x80] sm:$0xff] }
 0x140   : > { %702 = vmatpush.msra.mxu0 %v628_v40  ;;  %909 = vmatpush.msrb.mxu2 %v628_v40 }
 0x146   : > { %v461_v43 = vpop.f32.mrf.mxu1 }
 0x147   : > { %470 = vrot.lane.b32.xlu0 %v461_v43, %s1196_s26  ;;  %v651_v43 = vld [vmem:[#allocation10 + $0x138] sm:$0xff]  ;;  %s1131_s26 = scalar_lea.hbm %s1130_s14, 16 }
 0x148   : > { %718 = vmatpush.msrb.mxu3 %v651_v43  ;;  %p1132_p1 = scmp.ne.s32.totalorder %s1130_s14, %s1131_s26  ;;  %p1137_p2 = scmp.lt.s32.totalorder %s1135_s4, %s1131_s26 }
 0x14a   : > { %719 = vmatpush.msrb.mxu3 %v650_v45  ;;  %p1133_p4 = pnand %p1132_p1, %p1336_p3  ;;  %p1138_p10 = por %p1137_p2, %p1136_p9 }
 0x14c   : > { %720 = vmatpush.msrb.mxu3 %v649_v47  ;;  %p1134_p11 = pneg %p1133_p4 }
 0x14e   : > { %721 = vmatpush.msrb.mxu3 %v648_v49  ;;  %p1139_p12 = pnand %p1138_p10, %p1134_p11 }
 0x150   : > { %722 = vmatpush.msrb.mxu3 %v647_v50 }
 0x152   : > { %723 = vmatpush.msrb.mxu3 %v646_v51 }
 0x154   : > { %724 = vmatpush.msrb.mxu3 %v645_v52 }
 0x156   : > { %725 = vmatpush.msrb.mxu3 %v644_v53 }
 0x1b1   : > { %v469_v4 = vpop.permute.xlu0 %468 }
 0x1b2   : > { %v475_v6 = vsel %vm474_vm2, %v464_v2, %v469_v4 }
 0x1b3   : > { %477 = vst [vmem:[#allocation2 + $0x1] sm:$0xff] %v475_v6  ;;  %574 = vmatmul.f32.vlgmr.msra.gmra.mxu3 %v475_v6 }
 0x1b9   : > { %v471_v10 = vpop.permute.xlu0 %470 }
 0x1ba   : > { %v479_v11 = vld [vmem:[#allocation2] sm:$0xff]  ;;  %v476_v12 = vsel %vm474_vm2, %v465_v9, %v471_v10 }
 0x1bb   : > { %551 = vmatmul.f32.vlgmr.msra.gmra.mxu2 %v479_v11  ;;  %478 = vst [vmem:[#allocation2 + $0x9] sm:$0xff] %v476_v12  ;;  %577 = vmatmul.f32.gmra.mxu3 %v476_v12  ;;  %v994_v10 = vld [vmem:[%s1449_s7] ss:$0 sm:$0xff] }
 0x1c2   : > { %v480_v13 = vld [vmem:[#allocation2 + $0x8] sm:$0xff] }
 0x1c3   : > { %v481_v14 = vld [vmem:[#allocation2 + $0x2] sm:$0xff]  ;;  %554 = vmatmul.f32.gmra.mxu2 %v480_v13  ;;  %v482_v15 = vld [vmem:[#allocation2 + $0xa] sm:$0xff] }
 0x1c4   : > { %597 = vmatmul.f32.vlgmr.msrb.gmra.mxu0 %v481_v14 }
 0x1cc   : > { %600 = vmatmul.f32.gmra.mxu0 %v482_v15 }
 0x236   : > { %v575_v55 = vpop.f32.mrf.mxu3 }
 0x23e   : > { %v552_v56 = vpop.f32.mrf.mxu2  ;;  %v578_v0 = vpop.f32.mrf.mxu3 }
 0x23f   : > { %v553_v57 = vadd.f32 %v993_v54, %v552_v56 }
 0x241   : > { %v598_v58 = vpop.f32.mrf.mxu0  ;;  %v576_v59 = vadd.f32 %v575_v55, %v553_v57 }
 0x243   : > { %v599_v60 = vadd.f32 %v598_v58, %v576_v59 }
 0x245   : > { %v604_v61 = vmax.f32 %v599_v60, 0.0 }
 0x246   : > { %v555_v62 = vpop.f32.mrf.mxu2 }
 0x247   : > { %606 = vst [vmem:[#allocation3 + $0x1] sm:$0xff] %v604_v61  ;;  %v556_v63 = vadd.f32 %v993_v54, %v555_v62  ;;  %703 = vmatmul.f32.vlgmr.msra.gmra.mxu0 %v604_v61 }
 0x249   : > { %v579_v1 = vadd.f32 %v578_v0, %v556_v63  ;;  %v601_v2 = vpop.f32.mrf.mxu0 }
 0x24b   : > { %v602_v3 = vadd.f32 %v601_v2, %v579_v1 }
 0x24d   : > { %v605_v4 = vmax.f32 %v602_v3, 0.0 }
 0x24e   : > { %v608_v5 = vld [vmem:[#allocation3] sm:$0xff] }
 0x24f   : > { %607 = vst [vmem:[#allocation3 + $0x9] sm:$0xff] %v605_v4  ;;  %680 = vmatmul.f32.vlgmr.msrb.gmra.mxu1 %v608_v5  ;;  %706 = vmatmul.f32.vlgmr.msrb.gmra.mxu2 %v605_v4 }
 0x256   : > { %v609_v6 = vld [vmem:[#allocation3 + $0x8] sm:$0xff] }
 0x257   : > { %v610_v7 = vld [vmem:[#allocation3 + $0x2] sm:$0xff]  ;;  %683 = vmatmul.f32.gmra.mxu1 %v609_v6  ;;  %v611_v8 = vld [vmem:[#allocation3 + $0xa] sm:$0xff] }
 0x258   : > { %726 = vmatmul.f32.vlgmr.msrb.gmra.mxu3 %v610_v7 }
 0x260   : > { %729 = vmatmul.f32.gmra.mxu3 %v611_v8 }
 0x2c4   : > { %v704_v12 = vpop.f32.mrf.mxu0 }
 0x2cc   : > { %v681_v9 = vpop.f32.mrf.mxu1 }
 0x2cd   : > { %v682_v11 = vadd.f32 %v994_v10, %v681_v9 }
 0x2cf   : > { %v705_v13 = vadd.f32 %v704_v12, %v682_v11 }
 0x2d2   : > { %v707_v19 = vpop.f32.mrf.mxu2 }
 0x2d4   : > { %v684_v14 = vpop.f32.mrf.mxu1 }
 0x2d5   : > { %v685_v17 = vadd.f32 %v994_v10, %v684_v14 }
 0x2d7   : > { %v708_v20 = vadd.f32 %v707_v19, %v685_v17 }
 0x2db   : > { %v727_v15 = vpop.f32.mrf.mxu3 }
 0x2dc   : > { %v728_v16 = vadd.f32 %v727_v15, %v705_v13 }
 0x2de   : > { %v733_v18 = vmax.f32 %v728_v16, 0.0 }
 0x2e0   : > { %735 = vst [vmem:[%s388_s21] sm:$0xff] %v733_v18 }
 0x2e3   : > { %v730_v21 = vpop.f32.mrf.mxu3 }
 0x2e4   : > { %v731_v22 = vadd.f32 %v730_v21, %v708_v20 }
 0x2e6   : > { %v734_v23 = vmax.f32 %v731_v22, 0.0 }
 0x2e8   : > { %736 = vst [vmem:[%s388_s21 + $0x8] sm:$0xff] %v734_v23 }
 0x2e9   : > { %1142 = shalt.err (!%p1139_p12)
}
 0x2ea   : > { %s1198_s19 = smov 128   ;;  %s1199_s23 = smov 8  }
 0x2eb   : > { %924 = dma.vmem_to_hbm [thread:$0]  (%p1336_p3), %s751_s10, 256, %s753_s15, %s738_s9, %s1198_s19, %s1198_s19, %s1199_s23  }
 0x2ec PF: > { %s767_s24 = sand.u32 1, %s1177_s27   ;;  %p1465_p13 = scmp.ge.s32.totalorder %s1189_s30, 2 }
 0x2ed   : > { %s768_s11 = scalar_lea.sflag [#allocation6], %s767_s24 }
 0x2ee   : > { %p941_p0 = pnand %p1465_p13, %p1280_p6 }
 0x2f0   : > { %p942_p5 = pneg %p941_p0 }
 0x2f2   : > { %1172 = dma.done.wait (%p942_p5), %s768_s11, 256  }
 0x2f3   : > { %1174 = vsyncadd (%p942_p5), %s768_s11, 4294967040  ;;  %p23_p7 = scmp.ge.s32.totalorder %s1318_s18, 4   ;;  %s1466_s27 = smov %s1181_s28 }
 0x2f4   : > { %s1467_s28 = smov %s1185_s29  ;;  %s1468_s29 = smov %s1332_s25 }
 0x2f5   : > { %s1469_s30 = smov %s1318_s18  ;;  %25 = sbr.rel (!%p23_p7) target bundleno = 10 (0xa), region = 112 }
 0x2fa   :  { %774 = vsyncpa [#allocation5], 1 }
 0x2fb   :  { %776 = vsyncpa [#allocation5 + $0x1], 1 }
 0x2fc   :  { %777 = vsyncpa [#allocation8], 1 }
 0x2fd   :  { %778 = vsyncpa [#allocation11], 1 }
 0x2fe   :  { %779 = vsyncpa [#allocation6], 1 }
 0x2ff   :  { %781 = vsyncpa [#allocation6 + $0x1], 1 }

</bundles_post_ra>
